<compile_context>
chip_gen: v7x
topology: tpu7x:2x2x1
jax: 0.10.0
libtpu: 0.0.40
codegen_flags: <defaults>
</compile_context>

<pallas_src>
import functools

import jax
import jax.numpy as jnp
from jax import lax
from jax.experimental import pallas as pl
from jax.experimental.pallas import tpu as pltpu


def _round_up(x, m):
    return (x + m - 1) // m * m


def _patch_embed_kernel(*refs, use_norm, eps):
    # refs: patches (tile_n, K), weight (K, D), bias (1, D),
    #       [gamma (1, D), beta (1, D)], out (tile_n, D)
    if use_norm:
        p_ref, w_ref, b_ref, g_ref, bt_ref, o_ref = refs
    else:
        p_ref, w_ref, b_ref, o_ref = refs

    # MXU matmul in the streamed operands' native dtype (f32 or bf16);
    # accumulation and all elementwise/LayerNorm math stay in f32.
    y = jnp.dot(p_ref[...], w_ref[...], preferred_element_type=jnp.float32)
    y = y + b_ref[...].astype(jnp.float32)

    if use_norm:
        # NOTE: on the masked partial last grid block these rows include
        # padded/garbage data.  LayerNorm here is strictly per-row, so valid
        # rows are never contaminated and the output store mask discards the
        # padded rows -- do not turn this into a cross-row reduction.
        mean = jnp.mean(y, axis=-1, keepdims=True)
        c = y - mean
        var = jnp.mean(c * c, axis=-1, keepdims=True)
        y = c * lax.rsqrt(var + eps)
        y = y * g_ref[...].astype(jnp.float32) + bt_ref[...].astype(jnp.float32)

    o_ref[...] = y.astype(o_ref.dtype)


def patch_embed(x, weight, bias, gamma=None, beta=None, *,
                patch_size=16, inner_patches=4, eps=1e-5, tile_n=4096,
                allow_patch_fusion=True):
    """PatchEmbed forward.

    x:      [B, C, H, W]                   (NCHW, like the PyTorch module)
    weight: [D, C, cs, cs]  (PyTorch Conv2d layout), cs = patch_size // inner_patches
    bias:   [D]
    gamma/beta: optional LayerNorm(D) params (norm_layer); None = no norm.
    returns [B, num_patches, inner_patches, inner_patches, D]
    """
    B, C, H, W = x.shape
    D = weight.shape[0]
    cs = patch_size // inner_patches
    assert weight.shape == (D, C, cs, cs)
    assert H % patch_size == 0 and W % patch_size == 0

    pr0, pr1 = H // patch_size, W // patch_size     # patches_resolution
    num_patches = pr0 * pr1
    K = C * cs * cs
    N = B * num_patches * inner_patches * inner_patches   # == B * (H//cs) * (W//cs)

    # ---- glue: im2col of the non-overlapping cs x cs patches ---------------
    # Row order (b, pr0, pr1, inner_h, inner_w): the module's post-conv
    # view/permute is folded into this ordering, so the kernel output
    # reshapes directly into [B, num_patches, inner, inner, D] with no extra
    # HBM round-trip after the kernel.  Column order (c, dh, dw) matches
    # weight.reshape(D, K).
    patches = (x.reshape(B, C, pr0, inner_patches, cs, pr1, inner_patches, cs)
                 .transpose(0, 2, 5, 3, 6, 1, 4, 7)
                 .reshape(N, K))

    w_t = weight.reshape(D, K).T.astype(x.dtype)    # [K, D], streamed dtype
    b2d = bias.reshape(1, D)
    use_norm = gamma is not None

    # Big row tiles amortize the ~0.35 us per-grid-step overhead.  Cap so
    # (a) the grid keeps >= ~4 steps, letting the "parallel" axis shard
    #     across v7x's two TensorCores, and
    # (b) the double-buffered working set (2 * tile_n * (K + D) * bytes +
    #     weight) stays far below the 32 MiB scoped VMEM limit, which is the
    #     right bound for v7x's 64 MiB physical VMEM as well.
    tile_n = min(tile_n, _round_up(pl.cdiv(N, 4), 8))
    tile_n = max(tile_n, 8)
    grid = (pl.cdiv(N, tile_n),)                    # partial last block is masked

    in_specs = [
        pl.BlockSpec((tile_n, K), lambda i: (i, 0)),    # streamed patch rows
        pl.BlockSpec((K, D), lambda i: (0, 0)),         # weight (grid-resident)
        pl.BlockSpec((1, D), lambda i: (0, 0)),         # bias   (grid-resident)
    ]
    inputs = [patches, w_t, b2d]
    # Let XLA fuse the im2col transpose/reshape into the pallas_call input
    # (avoids materializing the [N, K] patch matrix as a standalone HBM copy).
    allow_fusion = [bool(allow_patch_fusion), False, False]
    if use_norm:
        in_specs += [pl.BlockSpec((1, D), lambda i: (0, 0)),
                     pl.BlockSpec((1, D), lambda i: (0, 0))]
        inputs += [gamma.reshape(1, D), beta.reshape(1, D)]
        allow_fusion += [False, False]

    kernel = functools.partial(_patch_embed_kernel, use_norm=use_norm, eps=eps)

    out_flat = pl.pallas_call(
        kernel,
        out_shape=jax.ShapeDtypeStruct((N, D), x.dtype),
        grid_spec=pltpu.PrefetchScalarGridSpec(
            num_scalar_prefetch=0,
            grid=grid,
            in_specs=in_specs,
            out_specs=pl.BlockSpec((tile_n, D), lambda i: (i, 0)),
        ),
        compiler_params=pltpu.CompilerParams(
            dimension_semantics=("parallel",),
            vmem_limit_bytes=32 * 1024 * 1024,
            allow_input_fusion=allow_fusion,
        ),
    )(*inputs)

    # Row order already matches the module's final layout -- pure reshape,
    # no permute / extra HBM copy.
    return out_flat.reshape(B, num_patches, inner_patches, inner_patches, D)


def _reference(x, weight, bias, gamma=None, beta=None, *,
               patch_size=16, inner_patches=4, eps=1e-5):
    """Pure-JAX reference that mirrors the PyTorch forward."""
    cs = patch_size // inner_patches
    y = lax.conv_general_dilated(
        x.astype(jnp.float32), weight.astype(jnp.float32),
        window_strides=(cs, cs), padding="VALID",
        dimension_numbers=("NCHW", "OIHW", "NCHW"),
        precision=lax.Precision.HIGHEST)
    y = y + bias.astype(jnp.float32)[None, :, None, None]
    B, D, Gh, Gw = y.shape
    pr0, pr1 = Gh // inner_patches, Gw // inner_patches
    y = (y.reshape(B, D, pr0, inner_patches, pr1, inner_patches)
          .transpose(0, 2, 4, 3, 5, 1)
          .reshape(B, pr0 * pr1, inner_patches, inner_patches, D))
    if gamma is not None:
        mean = jnp.mean(y, axis=-1, keepdims=True)
        var = jnp.mean((y - mean) ** 2, axis=-1, keepdims=True)
        y = (y - mean) * lax.rsqrt(var + eps)
        y = y * gamma.astype(jnp.float32) + beta.astype(jnp.float32)
    return y


if __name__ == "__main__":
    key = jax.random.PRNGKey(0)
    k_x, k_w, k_b, k_g, k_bt = jax.random.split(key, 5)

    # Small shapes consistent with the module defaults:
    #   in_chans=3, patch_size=16, inner_patches=4 (-> conv kernel=stride=4),
    #   embed_dim=128, spatial 32x32 -> patches_resolution 2x2, num_patches 4.
    B, C, H, W = 2, 3, 32, 32
    patch_size, inner_patches, embed_dim = 16, 4, 128
    cs = patch_size // inner_patches

    x = jax.random.normal(k_x, (B, C, H, W), dtype=jnp.float32)
    weight = 0.05 * jax.random.normal(k_w, (embed_dim, C, cs, cs), dtype=jnp.float32)
    bias = 0.1 * jax.random.normal(k_b, (embed_dim,), dtype=jnp.float32)

    pr = H // patch_size

    # Default module config: norm_layer=None (no LayerNorm).
    out = patch_embed(x, weight, bias,
                      patch_size=patch_size, inner_patches=inner_patches)
    out = jax.block_until_ready(out)
    ref = _reference(x, weight, bias,
                     patch_size=patch_size, inner_patches=inner_patches)
    assert out.shape == (B, pr * pr, inner_patches, inner_patches, embed_dim), out.shape
    assert jnp.allclose(out, ref.astype(out.dtype), atol=2e-3, rtol=2e-3), (
        float(jnp.max(jnp.abs(out - ref))))

    # Optional norm_layer=LayerNorm(embed_dim) path, fused into the same kernel.
    gamma = 1.0 + 0.1 * jax.random.normal(k_g, (embed_dim,), dtype=jnp.float32)
    beta = 0.1 * jax.random.normal(k_bt, (embed_dim,), dtype=jnp.float32)
    out_n = patch_embed(x, weight, bias, gamma, beta,
                        patch_size=patch_size, inner_patches=inner_patches)
    out_n = jax.block_until_ready(out_n)
    ref_n = _reference(x, weight, bias, gamma, beta,
                       patch_size=patch_size, inner_patches=inner_patches)
    assert jnp.allclose(out_n, ref_n.astype(out_n.dtype), atol=2e-3, rtol=2e-3), (
        float(jnp.max(jnp.abs(out_n - ref_n))))

    # bf16 streamed-operand path (halves the dominant HBM traffic); matmul
    # accumulation and LayerNorm math remain f32 inside the kernel.
    out_bf = patch_embed(x.astype(jnp.bfloat16), weight, bias,
                         patch_size=patch_size, inner_patches=inner_patches)
    out_bf = jax.block_until_ready(out_bf)
    assert out_bf.dtype == jnp.bfloat16
    assert jnp.allclose(out_bf.astype(jnp.float32), ref, atol=3e-2, rtol=3e-2), (
        float(jnp.max(jnp.abs(out_bf.astype(jnp.float32) - ref))))

    print("KERNEL_OK")
</pallas_src>

<mosaic_0001>
module attributes {stable_mosaic.version = 11 : i64} {
  func.func @_patch_embed_kernel(%arg0: i32, %arg1: memref<32x48xf32, #tpu.memory_space<vmem>>, %arg2: memref<48x128xf32, #tpu.memory_space<vmem>>, %arg3: memref<1x128xf32, #tpu.memory_space<vmem>>, %arg4: memref<32x128xf32, #tpu.memory_space<vmem>>) attributes {dimension_semantics = [#tpu.dimension_semantics<parallel>], iteration_bounds = array<i64: 4>, scalar_prefetch = 0 : i64, scratch_operands = 0 : i64, tpu.core_type = #tpu.core_type<tc>, window_params = [{transform_indices = @transform_0, window_bounds = array<i64: 32, 48>}, {pipeline_mode = #tpu.pipeline_mode<synchronous>, transform_indices = @transform_1, window_bounds = array<i64: 48, 128>}, {pipeline_mode = #tpu.pipeline_mode<synchronous>, transform_indices = @transform_2, window_bounds = array<i64: 1, 128>}, {transform_indices = @transform_3, window_bounds = array<i64: 32, 128>}]} {
    %c0 = arith.constant 0 : index
    %c0_0 = arith.constant 0 : index
    %0 = vector.load %arg1[%c0, %c0_0] : memref<32x48xf32, #tpu.memory_space<vmem>>, vector<32x48xf32>
    %c0_1 = arith.constant 0 : index
    %c0_2 = arith.constant 0 : index
    %1 = vector.load %arg2[%c0_1, %c0_2] : memref<48x128xf32, #tpu.memory_space<vmem>>, vector<48x128xf32>
    %cst = arith.constant dense<0.000000e+00> : vector<32x128xf32>
    %2 = tpu.matmul %0, %1, %cst {dimension_numbers = #tpu.dot_dimension_numbers<[1], [0], [0], [1], [0, 0, 1, 1], [], []>} : vector<32x48xf32>, vector<48x128xf32>, vector<32x128xf32> -> vector<32x128xf32>
    %c0_3 = arith.constant 0 : index
    %c0_4 = arith.constant 0 : index
    %3 = vector.load %arg3[%c0_3, %c0_4] : memref<1x128xf32, #tpu.memory_space<vmem>>, vector<1x128xf32>
    %4 = vector.broadcast %3 : vector<1x128xf32> to vector<32x128xf32>
    %5 = arith.addf %2, %4 : vector<32x128xf32>
    %c0_5 = arith.constant 0 : index
    %c0_6 = arith.constant 0 : index
    %6 = vector.load %arg4[%c0_5, %c0_6] : memref<32x128xf32, #tpu.memory_space<vmem>>, vector<32x128xf32>
    tpu.vector_store %arg4[%c0_5, %c0_6], %5 {strides = array<i32>} : memref<32x128xf32, #tpu.memory_space<vmem>>, vector<32x128xf32>,
    return
  }
  func.func @transform_0(%arg0: i32) -> (i32, i32) {
    %c0_i32 = arith.constant 0 : i32
    %c0_i32_0 = arith.constant 0 : i32
    return %arg0, %c0_i32 : i32, i32
  }
  func.func @transform_1(%arg0: i32) -> (i32, i32) {
    %c0_i32 = arith.constant 0 : i32
    %c0_i32_0 = arith.constant 0 : i32
    %c0_i32_1 = arith.constant 0 : i32
    return %c0_i32, %c0_i32_0 : i32, i32
  }
  func.func @transform_2(%arg0: i32) -> (i32, i32) {
    %c0_i32 = arith.constant 0 : i32
    %c0_i32_0 = arith.constant 0 : i32
    %c0_i32_1 = arith.constant 0 : i32
    return %c0_i32, %c0_i32_0 : i32, i32
  }
  func.func @transform_3(%arg0: i32) -> (i32, i32) {
    %c0_i32 = arith.constant 0 : i32
    %c0_i32_0 = arith.constant 0 : i32
    return %arg0, %c0_i32 : i32, i32
  }
}

</mosaic_0001>

<bundles_post_ra>
// kernel: tpu_custom_call.1
= control target key start
LH: loop header
LB: loop body
LE: loop exit
PB: predicated region body
PF: predicated region fallthrough
CT: control target
= control target key end

     0   :  { %8 = vsyncpa [#allocation3], 0  ;;  %s682_s0 = inlined_call_operand.vmem [shape: f32[128,48], index: 0, kind: input, shape index: {}]   ;;  %s683_s1 = inlined_call_operand.vmem [shape: f32[48,128], index: 1, kind: input, shape index: {}]   ;;  %s684_s2 = inlined_call_operand.vmem [shape: f32[1,128], index: 2, kind: input, shape index: {}]   ;;  %s685_s3 = inlined_call_operand.hbm [shape: f32[128,128], index: 3, kind: output, shape index: {}]  }
   0x1   :  { %10 = vsyncpa [#allocation3 + $0x1], 0  ;;  %s559_s12 = smov 0   ;;  %s561_s13 = smov 0  }
   0x2   :  { %s563_s14 = smov 0   ;;  %s565_s15 = smov 0  }
   0x3 LB: > { %s580_s16 = sadd.s32 4294967295, %s534_s15   ;;  %s367_s17 = sadd.s32 4294967294, %s534_s15   ;;  %s534_s15 = sphi %s565_s15, %s691_s15   ;;  %s530_s14 = sphi %s563_s14, %s690_s14   ;;  %s526_s13 = sphi %s561_s13, %s689_s13   ;;  %s522_s12 = sphi %s559_s12, %s688_s12  }
   0x4   : > { %s584_s18 = sadd.s32 1, %s534_s15   ;;  %s91_s19 = sadd.s32 1, %s530_s14 }
   0x5   : > { %s88_s20 = ssub.s32 %s534_s15, %s584_s18  ;;  %p101_p0 = scmp.ne.s32.totalorder %s530_s14, %s526_s13 }
   0x6   : > { %p89_p1 = scmp.eq.s32.totalorder %s88_s20, 0  ;;  %p102_p2 = scmp.eq.s32.totalorder %s580_s16, 3 }
   0x7   : > { %p107_p3 = scmp.ne.s32.totalorder %s526_s13, %s522_s12  ;;  %p108_p4 = scmp.eq.s32.totalorder %s367_s17, 3 }
   0x8   : > { %s595_s21 = scalar_select %p89_p1, %s530_s14, %s91_s19  }
   0x9   : > { %p597_p5 = por %p102_p2, %p101_p0  ;;  %p601_p6 = por %p108_p4, %p107_p3 }
   0xa   : > { %p370_p7 = scmp.ge.s32.totalorder %s534_s15, 1  ;;  %p141_p8 = scmp.lt.s32.totalorder %s534_s15, 5 }
   0xc   : > { %p142_p9 = pnand %p370_p7, %p141_p8 }
   0xd   : > { %v176_v0 = vld [vmem:[%s683_s1] sm:$0xff] (!%p142_p9)  ;;  %v177_v1 = vld [vmem:[%s683_s1 + $0x8] sm:$0xff] (!%p142_p9)  ;;  %v178_v2 = vld [vmem:[%s683_s1 + $0x10] sm:$0xff] (!%p142_p9)  ;;  %s372_s30 = sshll.u32 (!%p142_p9), %s580_s16, 2  ;;  %vm189_vm0 = vcmask (!%p142_p9), 392192   ;;  %s162_s20 = sand.u32 (!%p142_p9), 1, %s526_s13  }
   0xe   : > { %145 = sbr.rel (%p142_p9) target bundleno = 259 (0x103), region = 32  ;;  %v413_v3 = vpack.c.bf16 (!%p142_p9), %v177_v1, %v176_v0  ;;  %v179_v4 = vld [vmem:[%s683_s1 + $0x18] sm:$0xff] (!%p142_p9)  ;;  %p166_p10 = scmp.lt.s32.totalorder (!%p142_p9), %s372_s30, 15  ;;  %v180_v6 = vld [vmem:[%s683_s1 + $0x20] sm:$0xff] (!%p142_p9)  ;;  %v181_v7 = vld [vmem:[%s683_s1 + $0x28] sm:$0xff] (!%p142_p9) }
   0xf   : > { %v417_v5 = vpack.c.bf16 (!%p142_p9), %v179_v4, %v178_v2  ;;  %v421_v8 = vpack.c.bf16 (!%p142_p9), %v181_v7, %v180_v6  ;;  %s371_s24 = sshll.u32 (!%p142_p9), %s162_s20, 5  ;;  %v374_v13 = vld [vmem:[%s684_s2] ss:$0 sm:$0xff] (!%p142_p9)  ;;  %s384_s29 = sshll.u32 (!%p142_p9), %s580_s16, 9 }
  0x10   : > { %414 = vmatprep.subr.bf16.mxu0 (!%p142_p9), %v413_v3  ;;  %425 = vmatprep.subr.bf16.mxu1 (!%p142_p9), %v413_v3  ;;  %s164_s27 = scalar_lea.vmem (!%p142_p9), [#allocation2], %s371_s24  ;;  %s639_s5 = scalar_lea.hbm (!%p142_p9), %s685_s3, %s384_s29 }
  0x11   : > { %416 = vmatpush3.bf16.msra.mxu0 (!%p142_p9), %v413_v3  ;;  %428 = vmatpush3.bf16.msra.mxu1 (!%p142_p9), %v413_v3  ;;  %s305_s28 = sshll.u32 (!%p142_p9), %s164_s27, 4  ;;  %s641_s16 = scalar_lea.sflag (!%p142_p9), [#allocation3], %s162_s20  ;;  %s634_s28 = int_to_ptr.vmem [resolvable:$true] %s305_s28 }
  0x12   : > { %418 = vmatprep.subr.bf16.mxu0 (!%p142_p9), %v417_v5  ;;  %426 = vmatprep.subr.bf16.mxu1 (!%p142_p9), %v417_v5  ;;  %s472_s6 = scalar_lea.vmem (!%p142_p9), %s634_s28, 512  ;;  %s536_s7 = smov (!%p142_p9), [#allocation2]  }
  0x13   : > { %p473_p11 = scmp.ne.s32.totalorder (!%p142_p9), %s634_s28, %s472_s6  ;;  %s476_s8 = sshll.u32 (!%p142_p9), %s536_s7, 4  ;;  %s477_s8 = int_to_ptr.vmem [resolvable:$false] %s476_s8 }
  0x14   : > { %s478_s9 = scalar_lea.vmem (!%p142_p9), %s477_s8, 1024  ;;  %p479_p0 = scmp.lt.s32.totalorder (!%p142_p9), %s634_s28, %s477_s8 }
  0x15   : > { %s693_s30 = smov (!%p166_p10, %s372_s30), 15  ;;  %420 = vmatpush3.bf16.msra.mxu0 %v417_v5  ;;  %429 = vmatpush3.bf16.msra.mxu1 %v417_v5  ;;  %p474_p12 = pnand %p473_p11, %p597_p5 }
  0x16   : > { %s373_s10 = sshll.u32 %s693_s30, 3  ;;  %422 = vmatprep.subr.bf16.mxu0 %v421_v8  ;;  %427 = vmatprep.subr.bf16.mxu1 %v421_v8  ;;  %p480_p1 = scmp.lt.s32.totalorder %s478_s9, %s472_s6 }
  0x17   : > { %s169_s19 = scalar_lea.vmem %s682_s0, %s373_s10  ;;  %p475_p13 = pneg %p474_p12 }
  0x18   : > { %v172_v9 = vld [vmem:[%s169_s19] sm:$0xff]  ;;  %v174_v10 = vld [vmem:[%s169_s19 + $0x10] sm:$0xff]  ;;  %v173_v11 = vld [vmem:[%s169_s19 + $0x8] sm:$0xff]  ;;  %p481_p2 = por %p480_p1, %p479_p0 }
  0x19   : > { %407 = vmatprep.mubr.msk.f32.mxu0 %vm189_vm0, %v172_v9  ;;  %410 = vmatprep.mubr.msk.f32.mxu1 %vm189_vm0, %v174_v10  ;;  %v175_v12 = vld [vmem:[%s169_s19 + $0x18] sm:$0xff] }
  0x1a   : > { %424 = vmatpush3.bf16.msra.mxu0 %v421_v8  ;;  %430 = vmatpush3.bf16.msra.mxu1 %v421_v8  ;;  %p482_p3 = pnand %p481_p2, %p475_p13 }
  0x1d   : > { %408 = vmatmul.mubr.msk.f32.vlgmr.msra.gmra.mrb[0].mxu0 %vm189_vm0, %v173_v11  ;;  %411 = vmatmul.mubr.msk.f32.vlgmr.msra.gmra.mrb[0].mxu1 %vm189_vm0, %v175_v12 }
  0xf0   : > { %v409_v14 = vpop.f32.mrb[0].mxu0  ;;  %v412_v15 = vpop.f32.mrb[0].mxu1 }
  0xf1   : > { %v274_v16 = vadd.f32 %v409_v14, %v374_v13  ;;  %v284_v17 = vadd.f32 %v412_v15, %v374_v13  ;;  %v268_v18 = vpop.f32.mrb[1].mxu0  ;;  %v278_v19 = vpop.f32.mrb[1].mxu1 }
  0xf2   : > { %v269_v20 = vadd.f32 %v374_v13, %v268_v18  ;;  %v279_v21 = vadd.f32 %v374_v13, %v278_v19 }
  0xf3   : > { %288 = vst [vmem:[%s164_s27 + $0x8] sm:$0xff] %v274_v16  ;;  %290 = vst [vmem:[%s164_s27 + $0x18] sm:$0xff] %v284_v17 }
  0xf4   : > { %287 = vst [vmem:[%s164_s27] sm:$0xff] %v269_v20  ;;  %289 = vst [vmem:[%s164_s27 + $0x10] sm:$0xff] %v279_v21 }
  0xf5   : > { %485 = shalt.err (!%p482_p3)
}
  0xf6   : > { %s486_s10 = scalar_lea.hbm %s639_s5, 512  ;;  %s490_s19 = scalar_lea.hbm %s685_s3, 2048 }
  0xf7   : > { %p487_p4 = scmp.ne.s32.totalorder %s639_s5, %s486_s10  ;;  %p491_p9 = scmp.lt.u32.totalorder %s639_s5, %s685_s3 }
  0xf8   : > { %p492_p10 = scmp.lt.u32.totalorder %s490_s19, %s486_s10  ;;  %p494_p12 = scmp.lt.u32.totalorder %s486_s10, %s639_s5 }
  0xf9   : > { %p488_p7 = pnand %p487_p4, %p597_p5 }
  0xfa   : > { %p493_p11 = por %p492_p10, %p491_p9 }
  0xfb   : > { %p489_p8 = pneg %p488_p7 }
  0xfc   : > { %p495_p13 = por %p494_p12, %p493_p11 }
  0xfe   : > { %p496_p0 = pnand %p495_p13, %p489_p8 }
 0x100   : > { %499 = shalt.err (!%p496_p0)
}
 0x101   : > { %s537_s25 = smov 128   ;;  %s538_s26 = smov 8  }
 0x102   : > { %431 = dma.vmem_to_hbm [thread:$0]  (%p597_p5), %s634_s28, 512, %s639_s5, %s641_s16, %s537_s25, %s537_s25, %s538_s26  }
 0x103 PF: > { %p437_p1 = scmp.ge.s32.totalorder %s534_s15, 2  ;;  %s320_s27 = sand.u32 1, %s522_s12  }
 0x104   : > { %s321_s29 = scalar_lea.sflag [#allocation3], %s320_s27 }
 0x105   : > { %p434_p2 = pnand %p437_p1, %p601_p6 }
 0x107   : > { %517 = dma.done.wait (!%p434_p2), %s321_s29, 512  }
 0x108   : > { %519 = vsyncadd (!%p434_p2), %s321_s29, 4294966784  ;;  %p13_p3 = scmp.ge.s32.totalorder %s584_s18, 6   ;;  %s688_s12 = smov %s526_s13 }
 0x109   : > { %s689_s13 = smov %s530_s14  ;;  %s690_s14 = smov %s595_s21 }
 0x10a   : > { %s691_s15 = smov %s584_s18  ;;  %15 = sbr.rel (!%p13_p3) target bundleno = 3 (0x3), region = 67 }
 0x111   :  { %326 = vsyncpa [#allocation3], 1 }
 0x112   :  { %328 = vsyncpa [#allocation3 + $0x1], 1 }

</bundles_post_ra>
